<compile_context>
chip_gen: v7x
topology: tpu7x:2x2x1
jax: 0.10.0
libtpu: 0.0.40
codegen_flags: <defaults>
</compile_context>

<pallas_src>
import functools
import math

import jax
import jax.numpy as jnp
from jax.experimental import pallas as pl
from jax.experimental.pallas import tpu as pltpu


def _round_up(v, m):
    return (v + m - 1) // m * m


def _pick_tile(dim, target, align):
    """Return (tile, padded_dim) with tile % align == 0 and padded_dim % tile == 0."""
    target = _round_up(target, align)
    padded = _round_up(dim, align)
    if padded <= target:
        return padded, padded
    return target, _round_up(dim, target)


def _gelu_body(x_ref, w_ref, b_ref, o_ref, acc_ref, *, approx_recip):
    """Tiled matmul with K-reduction in the grid; bias folded into the k==0
    accumulator init, approx-GELU fused at the last K step."""
    k = pl.program_id(2)

    @pl.when(k == 0)
    def _():
        # Init accumulator with the broadcast bias (hoisted out of the epilogue).
        acc_ref[...] = jnp.broadcast_to(
            b_ref[...].astype(jnp.float32), acc_ref.shape
        )

    acc_ref[...] += jnp.dot(
        x_ref[...], w_ref[...], preferred_element_type=jnp.float32
    )

    @pl.when(k == pl.num_programs(2) - 1)
    def _():
        y = acc_ref[...]
        if approx_recip:
            # exp and approximate reciprocal both go to the EUP slot.
            out = y * pl.reciprocal(1.0 + jnp.exp(-1.702 * y), approx=True)
        else:
            out = y * jax.nn.sigmoid(1.702 * y)
        o_ref[...] = out.astype(o_ref.dtype)


def _kernel_acc_in_out(x_ref, w_ref, b_ref, o_ref, *, approx_recip):
    # f32 output: accumulate directly into the output block (resident across k).
    _gelu_body(x_ref, w_ref, b_ref, o_ref, o_ref, approx_recip=approx_recip)


def _kernel_with_scratch(x_ref, w_ref, b_ref, o_ref, acc_ref, *, approx_recip):
    # Low-precision output: keep a separate f32 VMEM accumulator.
    _gelu_body(x_ref, w_ref, b_ref, o_ref, acc_ref, approx_recip=approx_recip)


def approximate_gelu(x, w, b, *, tm=None, tn=None, tk=None, use_bf16=True):
    """x: [..., dim_in], w: [dim_in, dim_out], b: [dim_out] -> [..., dim_out]."""
    orig_shape = x.shape
    dim_in = orig_shape[-1]
    dim_out = w.shape[1]
    out_dtype = x.dtype

    x2d = x.reshape(-1, dim_in)
    M = x2d.shape[0]

    # bf16 is the MXU's native input format on v5e/v6e/v7x; f32 accumulation.
    if use_bf16 and x.dtype == jnp.float32:
        compute_dtype = jnp.bfloat16
    else:
        compute_dtype = x.dtype
    x2d = x2d.astype(compute_dtype)
    w = w.astype(compute_dtype)
    b2d = b.reshape(1, dim_out).astype(jnp.float32)

    # MXU/VPU aligned tiles: tm mult of 8 (16 for bf16), tn/tk mult of 128 with
    # 256/512-class targets for the 256x256 MXU on v6e/v7x.
    sub_align = 16 if compute_dtype == jnp.bfloat16 else 8
    tm, Mp = _pick_tile(M, tm or 256, sub_align)
    tn, Np = _pick_tile(dim_out, tn or 512, 128)
    tk, Kp = _pick_tile(dim_in, tk or 512, 128)

    # Zero-pad to tile multiples (padding contributes zero to the dot product;
    # padded rows/cols are sliced off after the call).
    if (Mp, Kp) != (M, dim_in):
        x2d = jnp.pad(x2d, ((0, Mp - M), (0, Kp - dim_in)))
    if (Kp, Np) != (dim_in, dim_out):
        w = jnp.pad(w, ((0, Kp - dim_in), (0, Np - dim_out)))
    if Np != dim_out:
        b2d = jnp.pad(b2d, ((0, 0), (0, Np - dim_out)))

    grid = (Mp // tm, Np // tn, Kp // tk)

    approx_recip = compute_dtype == jnp.bfloat16
    acc_in_out = out_dtype == jnp.float32
    if acc_in_out:
        kernel = functools.partial(_kernel_acc_in_out, approx_recip=approx_recip)
        scratch_shapes = []
        acc_bytes = 0
    else:
        kernel = functools.partial(_kernel_with_scratch, approx_recip=approx_recip)
        scratch_shapes = [pltpu.VMEM((tm, tn), jnp.float32)]
        acc_bytes = tm * tn * 4

    # Size the scoped VMEM limit from the actual (double-buffered) tile footprint.
    in_b = jnp.dtype(compute_dtype).itemsize
    out_b = jnp.dtype(out_dtype).itemsize
    footprint = (
        2 * (tm * tk + tk * tn) * in_b  # double-buffered x / w tiles
        + 2 * tn * 4                    # double-buffered bias tile
        + 2 * tm * tn * out_b           # double-buffered output tile
        + acc_bytes
    )
    vmem_limit = int(min(64 * 1024 * 1024, max(2 * footprint, 32 * 1024 * 1024)))

    out2d = pl.pallas_call(
        kernel,
        out_shape=jax.ShapeDtypeStruct((Mp, Np), out_dtype),
        grid_spec=pltpu.PrefetchScalarGridSpec(
            num_scalar_prefetch=0,
            grid=grid,
            in_specs=[
                pl.BlockSpec((tm, tk), lambda i, j, k: (i, k)),  # x tile
                pl.BlockSpec((tk, tn), lambda i, j, k: (k, j)),  # w tile
                pl.BlockSpec((1, tn), lambda i, j, k: (0, j)),   # bias tile
            ],
            out_specs=pl.BlockSpec((tm, tn), lambda i, j, k: (i, j)),
            scratch_shapes=scratch_shapes,
        ),
        compiler_params=pltpu.CompilerParams(
            dimension_semantics=("parallel", "parallel", "arbitrary"),
            vmem_limit_bytes=vmem_limit,
        ),
    )(x2d, w, b2d)

    out2d = out2d[:M, :dim_out]
    return out2d.reshape(*orig_shape[:-1], dim_out)


def _reference(x, w, b):
    y = jnp.einsum("...i,io->...o", x, w) + b
    return y * jax.nn.sigmoid(1.702 * y)


if __name__ == "__main__":
    batch, seq, dim_in, dim_out = 2, 8, 32, 32

    key = jax.random.PRNGKey(0)
    kx, kw, kb = jax.random.split(key, 3)

    # Deterministic parameter init (matches nn.Linear's uniform range).
    bound = 1.0 / math.sqrt(dim_in)
    w = jax.random.uniform(kw, (dim_in, dim_out), jnp.float32, -bound, bound)
    b = jax.random.uniform(kb, (dim_out,), jnp.float32, -bound, bound)
    x = jax.random.normal(kx, (batch, seq, dim_in), jnp.float32)

    ref = _reference(x, w, b)

    # Fast path: bf16 MXU inputs, f32 accumulation, EUP reciprocal epilogue.
    out = jax.block_until_ready(approximate_gelu(x, w, b, use_bf16=True))
    assert out.shape == (batch, seq, dim_out)
    assert jnp.allclose(out, ref, atol=2e-2, rtol=2e-2), float(
        jnp.max(jnp.abs(out - ref))
    )

    # Exact path: f32 inputs, exact sigmoid, tight tolerance.
    out_f32 = jax.block_until_ready(approximate_gelu(x, w, b, use_bf16=False))
    assert jnp.allclose(out_f32, ref, atol=1e-5, rtol=1e-5), float(
        jnp.max(jnp.abs(out_f32 - ref))
    )

    print("KERNEL_OK")
</pallas_src>

<mosaic_0001>
module attributes {stable_mosaic.version = 11 : i64} {
  func.func @_kernel_acc_in_out(%arg0: i32, %arg1: i32, %arg2: i32, %arg3: memref<16x128xbf16, #tpu.memory_space<vmem>>, %arg4: memref<128x128xbf16, #tpu.memory_space<vmem>>, %arg5: memref<1x128xf32, #tpu.memory_space<vmem>>, %arg6: memref<16x128xf32, #tpu.memory_space<vmem>>) attributes {dimension_semantics = [#tpu.dimension_semantics<parallel>, #tpu.dimension_semantics<parallel>, #tpu.dimension_semantics<arbitrary>], iteration_bounds = array<i64: 1, 1, 1>, scalar_prefetch = 0 : i64, scratch_operands = 0 : i64, tpu.core_type = #tpu.core_type<tc>, window_params = [{transform_indices = @transform_0, window_bounds = array<i64: 16, 128>}, {transform_indices = @transform_1, window_bounds = array<i64: 128, 128>}, {transform_indices = @transform_2, window_bounds = array<i64: 1, 128>}, {transform_indices = @transform_3, window_bounds = array<i64: 16, 128>}]} {
    %c0_i32 = arith.constant 0 : i32
    %0 = arith.cmpi eq, %arg2, %c0_i32 : i32
    %1 = arith.extui %0 : i1 to i32
    %c0_i32_0 = arith.constant 0 : i32
    %2 = arith.cmpi ne, %1, %c0_i32_0 : i32
    scf.if %2 {
      %c0_10 = arith.constant 0 : index
      %c0_11 = arith.constant 0 : index
      %12 = vector.load %arg5[%c0_10, %c0_11] : memref<1x128xf32, #tpu.memory_space<vmem>>, vector<1x128xf32>
      %13 = vector.shape_cast %12 : vector<1x128xf32> to vector<1x128xf32>
      %14 = vector.broadcast %13 : vector<1x128xf32> to vector<16x128xf32>
      %c0_12 = arith.constant 0 : index
      %c0_13 = arith.constant 0 : index
      %15 = vector.load %arg6[%c0_12, %c0_13] : memref<16x128xf32, #tpu.memory_space<vmem>>, vector<16x128xf32>
      tpu.vector_store %arg6[%c0_12, %c0_13], %14 {strides = array<i32>} : memref<16x128xf32, #tpu.memory_space<vmem>>, vector<16x128xf32>,
    } else {
    }
    %c0 = arith.constant 0 : index
    %c0_1 = arith.constant 0 : index
    %3 = vector.load %arg6[%c0, %c0_1] : memref<16x128xf32, #tpu.memory_space<vmem>>, vector<16x128xf32>
    %c0_2 = arith.constant 0 : index
    %c0_3 = arith.constant 0 : index
    %4 = vector.load %arg3[%c0_2, %c0_3] : memref<16x128xbf16, #tpu.memory_space<vmem>>, vector<16x128xbf16>
    %c0_4 = arith.constant 0 : index
    %c0_5 = arith.constant 0 : index
    %5 = vector.load %arg4[%c0_4, %c0_5] : memref<128x128xbf16, #tpu.memory_space<vmem>>, vector<128x128xbf16>
    %cst = arith.constant dense<0.000000e+00> : vector<16x128xf32>
    %6 = tpu.matmul %4, %5, %cst {dimension_numbers = #tpu.dot_dimension_numbers<[1], [0], [0], [1], [0, 0, 1, 1], [], []>} : vector<16x128xbf16>, vector<128x128xbf16>, vector<16x128xf32> -> vector<16x128xf32>
    %7 = arith.addf %3, %6 : vector<16x128xf32>
    %c0_6 = arith.constant 0 : index
    %c0_7 = arith.constant 0 : index
    %8 = vector.load %arg6[%c0_6, %c0_7] : memref<16x128xf32, #tpu.memory_space<vmem>>, vector<16x128xf32>
    tpu.vector_store %arg6[%c0_6, %c0_7], %7 {strides = array<i32>} : memref<16x128xf32, #tpu.memory_space<vmem>>, vector<16x128xf32>,
    %c0_i32_8 = arith.constant 0 : i32
    %9 = arith.cmpi eq, %arg2, %c0_i32_8 : i32
    %10 = arith.extui %9 : i1 to i32
    %c0_i32_9 = arith.constant 0 : i32
    %11 = arith.cmpi ne, %10, %c0_i32_9 : i32
    scf.if %11 {
      %c0_10 = arith.constant 0 : index
      %c0_11 = arith.constant 0 : index
      %12 = vector.load %arg6[%c0_10, %c0_11] : memref<16x128xf32, #tpu.memory_space<vmem>>, vector<16x128xf32>
      %cst_12 = arith.constant -1.702000e+00 : f32
      %13 = vector.broadcast %cst_12 : f32 to vector<16x128xf32>
      %14 = arith.mulf %13, %12 : vector<16x128xf32>
      %15 = math.exp %14 : vector<16x128xf32>
      %cst_13 = arith.constant 1.000000e+00 : f32
      %16 = vector.broadcast %cst_13 : f32 to vector<16x128xf32>
      %17 = arith.addf %16, %15 : vector<16x128xf32>
      %18 = tpu.reciprocal %17 {approx = true} : vector<16x128xf32> -> vector<16x128xf32>
      %19 = arith.mulf %12, %18 : vector<16x128xf32>
      %c0_14 = arith.constant 0 : index
      %c0_15 = arith.constant 0 : index
      %20 = vector.load %arg6[%c0_14, %c0_15] : memref<16x128xf32, #tpu.memory_space<vmem>>, vector<16x128xf32>
      tpu.vector_store %arg6[%c0_14, %c0_15], %19 {strides = array<i32>} : memref<16x128xf32, #tpu.memory_space<vmem>>, vector<16x128xf32>,
    } else {
    }
    return
  }
  func.func @transform_0(%arg0: i32, %arg1: i32, %arg2: i32) -> (i32, i32) {
    %c0_i32 = arith.constant 0 : i32
    return %arg0, %arg2 : i32, i32
  }
  func.func @transform_1(%arg0: i32, %arg1: i32, %arg2: i32) -> (i32, i32) {
    %c0_i32 = arith.constant 0 : i32
    return %arg2, %arg1 : i32, i32
  }
  func.func @transform_2(%arg0: i32, %arg1: i32, %arg2: i32) -> (i32, i32) {
    %c0_i32 = arith.constant 0 : i32
    %c0_i32_0 = arith.constant 0 : i32
    return %c0_i32, %arg1 : i32, i32
  }
  func.func @transform_3(%arg0: i32, %arg1: i32, %arg2: i32) -> (i32, i32) {
    %c0_i32 = arith.constant 0 : i32
    return %arg0, %arg1 : i32, i32
  }
}

</mosaic_0001>

<bundles_post_ra>
// kernel: tpu_custom_call.1
= control target key start
LH: loop header
LB: loop body
LE: loop exit
PB: predicated region body
PF: predicated region fallthrough
CT: control target
= control target key end

     0   :  { %8 = vsyncpa [#allocation3], 0  ;;  %s418_s0 = inlined_call_operand.hbm [shape: bf16[16,128], index: 0, kind: input, shape index: {}]   ;;  %s419_s1 = inlined_call_operand.hbm [shape: bf16[128,128], index: 1, kind: input, shape index: {}]   ;;  %s420_s2 = inlined_call_operand.vmem [shape: f32[1,128], index: 2, kind: input, shape index: {}]   ;;  %s421_s3 = inlined_call_operand.hbm [shape: f32[16,128], index: 3, kind: output, shape index: {}]  }
   0x1   :  { %9 = vsyncpa [#allocation6], 0 }
   0x2   :  { %10 = vsyncpa [#allocation4], 0  ;;  %s350_s12 = smov [#allocation2]   ;;  %s278_s16 = scalar_lea.hbm %s418_s0, 128 }
   0x3   :  { %s16_s13 = sshll.u32 %s350_s12, 4  ;;  %p279_p0 = scmp.ne.s32.totalorder %s418_s0, %s278_s16  ;;  %s17_s13 = int_to_ptr.vmem [resolvable:$true] %s16_s13 }
   0x4   :  { %p282_p1 = scmp.lt.u32.totalorder %s278_s16, %s418_s0 }
   0x6   :  { %p284_p2 = pnand %p282_p1, %p279_p0 }
   0x8   :  { %287 = shalt.err (!%p284_p2)
}
   0x9   :  { %s288_s21 = scalar_lea.vmem %s17_s13, 128  ;;  %p293_p4 = scmp.lt.s32.totalorder %s17_s13, %s17_s13 }
   0xa   :  { %p289_p3 = scmp.ne.s32.totalorder %s17_s13, %s288_s21  ;;  %p294_p5 = scmp.lt.s32.totalorder %s288_s21, %s288_s21 }
   0xc   :  { %p295_p6 = por %p294_p5, %p293_p4 }
   0xe   :  { %p296_p7 = pnand %p295_p6, %p289_p3 }
  0x10   :  { %299 = shalt.err (!%p296_p7)
}
  0x11   :  { %s351_s22 = smov 64   ;;  %s352_s23 = smov 4  }
  0x12   :  { %22 = dma.hbm_to_vmem [thread:$0]  %s418_s0, 128, %s17_s13, [#allocation3], %s351_s22, %s351_s22, %s352_s23  }
  0x13   :  { %s353_s26 = smov [#allocation5]   ;;  %s300_s30 = scalar_lea.hbm %s419_s1, 1024 }
  0x14   :  { %s28_s27 = sshll.u32 %s353_s26, 4  ;;  %p301_p8 = scmp.ne.s32.totalorder %s419_s1, %s300_s30  ;;  %s29_s27 = int_to_ptr.vmem [resolvable:$true] %s28_s27 }
  0x15   :  { %p304_p9 = scmp.lt.u32.totalorder %s300_s30, %s419_s1 }
  0x17   :  { %p306_p10 = pnand %p304_p9, %p301_p8 }
  0x19   :  { %309 = shalt.err (!%p306_p10)
}
  0x1a   :  { %s310_s8 = scalar_lea.vmem %s29_s27, 1024  ;;  %p315_p12 = scmp.lt.s32.totalorder %s29_s27, %s29_s27 }
  0x1b   :  { %p311_p11 = scmp.ne.s32.totalorder %s29_s27, %s310_s8  ;;  %p316_p13 = scmp.lt.s32.totalorder %s310_s8, %s310_s8 }
  0x1d   :  { %p317_p0 = por %p316_p13, %p315_p12 }
  0x1f   :  { %p318_p1 = pnand %p317_p0, %p311_p11 }
  0x21   :  { %321 = shalt.err (!%p318_p1)
}
  0x22   :  { %34 = dma.hbm_to_vmem [thread:$0]  %s419_s1, 1024, %s29_s27, [#allocation6], %s351_s22, %s351_s22, %s352_s23  }
  0x23   :  { %344 = dma.done.wait [#allocation3], 128  }
  0x24   :  { %345 = vsyncadd [#allocation3], 4294967168 }
  0x25   :  { %346 = dma.done.wait [#allocation6], 1024  }
  0x26   :  { %347 = vsyncadd [#allocation6], 4294966272  ;;  %v354_v0 = vmov 0.0   ;;  %vm355_vm0 = vmmov 0   ;;  %v261_v1 = vld [vmem:[#allocation5] sm:$0xff]   ;;  %v262_v2 = vld [vmem:[#allocation5 + $0x8] sm:$0xff]  }
  0x27   :  { %232 = vmatprep.subr.bf16.mxu0 %v354_v0  ;;  %248 = vmatprep.mubr.msk.bf16.mxu0 %vm355_vm0, %v354_v0  ;;  %v263_v3 = vld [vmem:[#allocation5 + $0x10] sm:$0xff]   ;;  %v264_v4 = vld [vmem:[#allocation5 + $0x18] sm:$0xff]   ;;  %v265_v5 = vld [vmem:[#allocation5 + $0x20] sm:$0xff]   ;;  %s356_s11 = smov [#allocation7]  }
  0x28   :  { %233 = vmatpush3.bf16.msra.mxu0 %v261_v1  ;;  %v266_v6 = vld [vmem:[#allocation5 + $0x28] sm:$0xff]   ;;  %v267_v7 = vld [vmem:[#allocation5 + $0x30] sm:$0xff]   ;;  %v268_v8 = vld [vmem:[#allocation5 + $0x38] sm:$0xff]  }
  0x29   :  { %234 = vmatprep.subr.bf16.mxu0 %v354_v0  ;;  %v269_v9 = vld [vmem:[#allocation2] sm:$0xff]  }
  0x2a   :  { %v213_v10 = vld [vmem:[%s420_s2] ss:$0 sm:$0xff]  ;;  %s200_s2 = sshll.u32 %s356_s11, 4  ;;  %s201_s2 = int_to_ptr.vmem [resolvable:$true] %s200_s2 }
  0x2b   :  { %s322_s12 = scalar_lea.vmem %s201_s2, 256  ;;  %p327_p3 = scmp.lt.s32.totalorder %s201_s2, %s201_s2 }
  0x2c   :  { %235 = vmatpush3.bf16.msra.mxu0 %v262_v2  ;;  %p323_p2 = scmp.ne.s32.totalorder %s201_s2, %s322_s12  ;;  %p328_p4 = scmp.lt.s32.totalorder %s322_s12, %s322_s12 }
  0x2d   :  { %236 = vmatprep.subr.bf16.mxu0 %v354_v0 }
  0x2e   :  { %p329_p5 = por %p328_p4, %p327_p3 }
  0x30   :  { %237 = vmatpush3.bf16.msra.mxu0 %v263_v3  ;;  %p330_p6 = pnand %p329_p5, %p323_p2 }
  0x31   :  { %238 = vmatprep.subr.bf16.mxu0 %v354_v0 }
  0x34   :  { %239 = vmatpush3.bf16.msra.mxu0 %v264_v4 }
  0x35   :  { %240 = vmatprep.subr.bf16.mxu0 %v354_v0 }
  0x38   :  { %241 = vmatpush3.bf16.msra.mxu0 %v265_v5 }
  0x39   :  { %242 = vmatprep.subr.bf16.mxu0 %v354_v0 }
  0x3c   :  { %243 = vmatpush3.bf16.msra.mxu0 %v266_v6 }
  0x3d   :  { %244 = vmatprep.subr.bf16.mxu0 %v354_v0 }
  0x40   :  { %245 = vmatpush3.bf16.msra.mxu0 %v267_v7 }
  0x41   :  { %246 = vmatprep.subr.bf16.mxu0 %v354_v0 }
  0x44   :  { %247 = vmatpush3.bf16.msra.mxu0 %v268_v8 }
  0x47   :  { %249 = vmatmul.mubr.bf16.vlgmr.msra.gmra.mrb[0].mxu0 %v269_v9 }
 0x11a   :  { %v165_v11 = vpop.f32.mrb[0].mxu0 }
 0x11b   :  { %v172_v12 = vadd.f32 %v213_v10, %v165_v11  ;;  %v250_v13 = vpop.f32.mrb[1].mxu0 }
 0x11c   :  { %v168_v14 = vpop.f32.mrb[2].mxu0 }
 0x11d   :  { %v173_v15 = vadd.f32 %v213_v10, %v168_v14  ;;  %v251_v16 = vpop.f32.mrb[3].mxu0  ;;  %v181_v17 = vmul.f32 -1.702, %v172_v12 }
 0x11f   :  { %v182_v18 = vmul.f32 -1.702, %v173_v15  ;;  %v183_v19 = vmul.f32 1.442695, %v181_v17 }
 0x121   :  { %270 = vpow2.f32 %v183_v19  ;;  %v185_v20 = vmul.f32 1.442695, %v182_v18 }
 0x123   :  { %272 = vpow2.f32 %v185_v20 }
 0x12b   :  { %v271_v21 = vpop.eup %270 }
 0x12c   :  { %v187_v22 = vadd.f32 1.0, %v271_v21 }
 0x12d   :  { %v273_v23 = vpop.eup %272 }
 0x12e   :  { %v188_v24 = vadd.f32 1.0, %v273_v23  ;;  %274 = vrcp.f32 %v187_v22 }
 0x130   :  { %276 = vrcp.f32 %v188_v24 }
 0x138   :  { %v275_v25 = vpop.eup %274 }
 0x139   :  { %v191_v26 = vmul.f32 %v275_v25, %v172_v12 }
 0x13a   :  { %v277_v27 = vpop.eup %276 }
 0x13b   :  { %v192_v28 = vmul.f32 %v277_v27, %v173_v15  ;;  %193 = vst [vmem:[#allocation7] sm:$0xff] %v191_v26 }
 0x13d   :  { %194 = vst [vmem:[#allocation7 + $0x8] sm:$0xff] %v192_v28 }
 0x13e   :  { %333 = shalt.err (!%p330_p6)
}
 0x13f   :  { %s334_s15 = scalar_lea.hbm %s421_s3, 256 }
 0x140   :  { %p335_p7 = scmp.ne.s32.totalorder %s421_s3, %s334_s15  ;;  %p338_p8 = scmp.lt.u32.totalorder %s334_s15, %s421_s3 }
 0x142   :  { %p340_p9 = pnand %p338_p8, %p335_p7 }
 0x144   :  { %343 = shalt.err (!%p340_p9)
}
 0x145   :  { %s357_s20 = smov 128   ;;  %s358_s21 = smov 8  }
 0x146   :  { %206 = dma.vmem_to_hbm [thread:$0]  %s201_s2, 256, %s421_s3, [#allocation4], %s357_s20, %s357_s20, %s358_s21  }
 0x147   :  { %348 = dma.done.wait [#allocation4], 256  }
 0x148   :  { %349 = vsyncadd [#allocation4], 4294967040 }
 0x149   :  { %210 = vsyncpa [#allocation3], 1 }
 0x14a   :  { %211 = vsyncpa [#allocation6], 1 }
 0x14b   :  { %212 = vsyncpa [#allocation4], 1 }

</bundles_post_ra>
